<compile_context>
chip_gen: v5e
topology: v5e:2x2
jax: 0.10.0
libtpu: 0.0.40
codegen_flags: <defaults>
</compile_context>

<pallas_src>
import functools

import jax
import jax.numpy as jnp
from jax.experimental import pallas as pl
from jax.experimental.pallas import tpu as pltpu


LEAKY_SLOPE = 0.2  # matches nn.LeakyReLU(0.2) in the PyTorch model


def _leaky_relu(x, slope=LEAKY_SLOPE):
    return jnp.where(x > 0, x, slope * x)


def _round_up(n, m):
    return (n + m - 1) // m * m


def vae_kernel(
    # batch-tiled inputs
    x_ref, eps_ref,
    # VMEM-resident encoder params
    w_in_ref, b_in_ref, w_in2_ref, b_in2_ref, w_mv_ref, b_mv_ref,
    # VMEM-resident decoder params
    w_h_ref, b_h_ref, w_h2_ref, b_h2_ref, w_out_ref, b_out_ref,
    # batch-tiled outputs
    xhat_ref, mv_ref,
    *, latent_dim,
):
    x = x_ref[...]                                              # (TB, 896)

    # ---- Encoder ----
    h = jnp.dot(x, w_in_ref[...], preferred_element_type=jnp.float32)
    h = _leaky_relu(h + b_in_ref[...])
    h = jnp.dot(h, w_in2_ref[...], preferred_element_type=jnp.float32)
    h = _leaky_relu(h + b_in2_ref[...])

    # Fused mean / log_var head: one MXU dispatch, one lane-denser store.
    mv = jnp.dot(h, w_mv_ref[...], preferred_element_type=jnp.float32)
    mv = mv + b_mv_ref[...]                                     # (TB, 2*latent)
    mean = mv[:, :latent_dim]
    log_var = mv[:, latent_dim:]

    # ---- Reparameterization: z = mean + exp(0.5 * log_var) * eps ----
    z = mean + jnp.exp(0.5 * log_var) * eps_ref[...]

    # ---- Decoder ----
    d = jnp.dot(z, w_h_ref[...], preferred_element_type=jnp.float32)
    d = _leaky_relu(d + b_h_ref[...])
    d = jnp.dot(d, w_h2_ref[...], preferred_element_type=jnp.float32)
    d = _leaky_relu(d + b_h2_ref[...])
    o = jnp.dot(d, w_out_ref[...], preferred_element_type=jnp.float32)
    o = o + b_out_ref[...]                                      # (TB, 896)

    xhat_ref[...] = jax.nn.sigmoid(o)
    mv_ref[...] = mv


@jax.jit
def vae_forward(x, eps, params):
    """x: (B, 1, 28, 28) float32, eps: (B, latent_dim) float32."""
    B = x.shape[0]
    in_dim = 28 * 28
    latent_dim = params["w_mean"].shape[1]
    hidden_dim = params["w_out"].shape[0]
    out_dim = params["w_out"].shape[1]                          # 784

    # Lane alignment: pad the ragged 784 dims up to a multiple of 128 (-> 896).
    in_pad = _round_up(in_dim, 128)
    out_pad = _round_up(out_dim, 128)

    # Batch tile: fill MXU rows (256) when possible; keep sublane-aligned (8).
    TB = min(256, _round_up(B, 8))
    B_pad = _round_up(B, TB)
    grid = (B_pad // TB,)

    # ---- Input padding (batch + lanes) ----
    x_flat = x.reshape(B, in_dim)
    x_p = jnp.zeros((B_pad, in_pad), jnp.float32).at[:B, :in_dim].set(x_flat)
    eps_p = jnp.zeros((B_pad, latent_dim), jnp.float32).at[:B].set(eps)

    # ---- Parameter prep: lane-pad w_in / w_out, fuse mean & var heads ----
    w_in = jnp.zeros((in_pad, params["w_in"].shape[1]), jnp.float32)
    w_in = w_in.at[:in_dim].set(params["w_in"])
    w_mv = jnp.concatenate([params["w_mean"], params["w_var"]], axis=1)
    b_mv = jnp.concatenate([params["b_mean"], params["b_var"]], axis=1)
    w_out = jnp.zeros((hidden_dim, out_pad), jnp.float32)
    w_out = w_out.at[:, :out_dim].set(params["w_out"])
    b_out = jnp.zeros((1, out_pad), jnp.float32).at[:, :out_dim].set(params["b_out"])

    weights = (
        w_in, params["b_in"], params["w_in2"], params["b_in2"], w_mv, b_mv,
        params["w_h"], params["b_h"], params["w_h2"], params["b_h2"],
        w_out, b_out,
    )

    def tiled(d):
        # Batch-tiled activation: new block each grid step (pipelined).
        return pl.BlockSpec((TB, d), lambda i: (i, 0))

    def resident(shape):
        # Full array, constant index_map -> stays resident in VMEM.
        return pl.BlockSpec(shape, lambda i: (0, 0))

    in_specs = [tiled(in_pad), tiled(latent_dim)]
    in_specs += [resident(w.shape) for w in weights]
    out_specs = (tiled(out_pad), tiled(2 * latent_dim))

    # Right-sized VMEM budget: resident params + double-buffered tiles + slack.
    tile_bytes = 4 * TB * (in_pad + latent_dim + out_pad + 2 * latent_dim)
    param_bytes = sum(4 * w.size for w in weights)
    vmem_limit = int(2 * param_bytes + 2 * tile_bytes + (16 << 20))

    xhat_p, mv = pl.pallas_call(
        functools.partial(vae_kernel, latent_dim=latent_dim),
        grid=grid,
        out_shape=(
            jax.ShapeDtypeStruct((B_pad, out_pad), jnp.float32),
            jax.ShapeDtypeStruct((B_pad, 2 * latent_dim), jnp.float32),
        ),
        in_specs=in_specs,
        out_specs=out_specs,
        compiler_params=pltpu.CompilerParams(
            dimension_semantics=("parallel",),   # megacore sharding on v7x
            vmem_limit_bytes=vmem_limit,
        ),
    )(x_p, eps_p, *weights)

    x_hat = xhat_p[:B, :out_dim].reshape(-1, 1, 28, 28)
    mean = mv[:B, :latent_dim]
    log_var = mv[:B, latent_dim:]
    return x_hat, mean, log_var


def init_params(key, input_dim, hidden_dim, latent_dim, output_dim):
    """Deterministic synthetic weights, stored as (in, out); biases as (1, out)."""
    keys = jax.random.split(key, 14)

    def lin(kw, kb, fan_in, fan_out):
        scale = 1.0 / jnp.sqrt(fan_in)
        w = jax.random.uniform(kw, (fan_in, fan_out), jnp.float32, -scale, scale)
        b = jax.random.uniform(kb, (1, fan_out), jnp.float32, -scale, scale)
        return w, b

    p = {}
    p["w_in"], p["b_in"] = lin(keys[0], keys[1], input_dim, hidden_dim)
    p["w_in2"], p["b_in2"] = lin(keys[2], keys[3], hidden_dim, hidden_dim)
    p["w_mean"], p["b_mean"] = lin(keys[4], keys[5], hidden_dim, latent_dim)
    p["w_var"], p["b_var"] = lin(keys[6], keys[7], hidden_dim, latent_dim)
    p["w_h"], p["b_h"] = lin(keys[8], keys[9], latent_dim, hidden_dim)
    p["w_h2"], p["b_h2"] = lin(keys[10], keys[11], hidden_dim, hidden_dim)
    p["w_out"], p["b_out"] = lin(keys[12], keys[13], hidden_dim, output_dim)
    return p


if __name__ == "__main__":
    B = 8
    input_dim = 28 * 28        # fixed by x.view(-1, 28*28)
    hidden_dim = 64
    latent_dim = 16
    output_dim = 28 * 28       # fixed by reshape(-1, 1, 28, 28)

    root = jax.random.PRNGKey(0)
    k_x, k_eps, k_params = jax.random.split(root, 3)

    x = jax.random.normal(k_x, (B, 1, 28, 28), jnp.float32)
    # epsilon ~ N(0, 1), matching torch.randn_like(var) in reparameterization
    eps = jax.random.normal(k_eps, (B, latent_dim), jnp.float32)
    params = init_params(k_params, input_dim, hidden_dim, latent_dim, output_dim)

    x_hat, mean, log_var = vae_forward(x, eps, params)
    jax.block_until_ready((x_hat, mean, log_var))

    assert x_hat.shape == (B, 1, 28, 28)
    assert mean.shape == (B, latent_dim)
    assert log_var.shape == (B, latent_dim)

    # Sanity-check against a pure-JAX reference of the same math.
    def ref(x, eps, p):
        xf = x.reshape(-1, 784)
        lr = lambda t: jnp.where(t > 0, t, LEAKY_SLOPE * t)
        h = lr(xf @ p["w_in"] + p["b_in"])
        h = lr(h @ p["w_in2"] + p["b_in2"])
        m = h @ p["w_mean"] + p["b_mean"]
        lv = h @ p["w_var"] + p["b_var"]
        z = m + jnp.exp(0.5 * lv) * eps
        d = lr(z @ p["w_h"] + p["b_h"])
        d = lr(d @ p["w_h2"] + p["b_h2"])
        xh = jax.nn.sigmoid(d @ p["w_out"] + p["b_out"])
        return xh.reshape(-1, 1, 28, 28), m, lv

    r_xh, r_m, r_lv = ref(x, eps, params)
    assert jnp.allclose(x_hat, r_xh, atol=1e-5)
    assert jnp.allclose(mean, r_m, atol=1e-5)
    assert jnp.allclose(log_var, r_lv, atol=1e-5)

    print("KERNEL_OK")
</pallas_src>

<mosaic_0001>
module attributes {stable_mosaic.version = 11 : i64} {
  func.func @vae_kernel(%arg0: i32, %arg1: memref<8x896xf32, #tpu.memory_space<vmem>>, %arg2: memref<8x16xf32, #tpu.memory_space<vmem>>, %arg3: memref<896x64xf32, #tpu.memory_space<vmem>>, %arg4: memref<1x64xf32, #tpu.memory_space<vmem>>, %arg5: memref<64x64xf32, #tpu.memory_space<vmem>>, %arg6: memref<1x64xf32, #tpu.memory_space<vmem>>, %arg7: memref<64x32xf32, #tpu.memory_space<vmem>>, %arg8: memref<1x32xf32, #tpu.memory_space<vmem>>, %arg9: memref<16x64xf32, #tpu.memory_space<vmem>>, %arg10: memref<1x64xf32, #tpu.memory_space<vmem>>, %arg11: memref<64x64xf32, #tpu.memory_space<vmem>>, %arg12: memref<1x64xf32, #tpu.memory_space<vmem>>, %arg13: memref<64x896xf32, #tpu.memory_space<vmem>>, %arg14: memref<1x896xf32, #tpu.memory_space<vmem>>, %arg15: memref<8x896xf32, #tpu.memory_space<vmem>>, %arg16: memref<8x32xf32, #tpu.memory_space<vmem>>) attributes {dimension_semantics = [#tpu.dimension_semantics<parallel>], iteration_bounds = array<i64: 1>, scalar_prefetch = 0 : i64, scratch_operands = 0 : i64, tpu.core_type = #tpu.core_type<tc>, window_params = [{transform_indices = @transform_0, window_bounds = array<i64: 8, 896>}, {transform_indices = @transform_1, window_bounds = array<i64: 8, 16>}, {pipeline_mode = #tpu.pipeline_mode<synchronous>, transform_indices = @transform_2, window_bounds = array<i64: 896, 64>}, {pipeline_mode = #tpu.pipeline_mode<synchronous>, transform_indices = @transform_3, window_bounds = array<i64: 1, 64>}, {pipeline_mode = #tpu.pipeline_mode<synchronous>, transform_indices = @transform_4, window_bounds = array<i64: 64, 64>}, {pipeline_mode = #tpu.pipeline_mode<synchronous>, transform_indices = @transform_5, window_bounds = array<i64: 1, 64>}, {pipeline_mode = #tpu.pipeline_mode<synchronous>, transform_indices = @transform_6, window_bounds = array<i64: 64, 32>}, {pipeline_mode = #tpu.pipeline_mode<synchronous>, transform_indices = @transform_7, window_bounds = array<i64: 1, 32>}, {pipeline_mode = #tpu.pipeline_mode<synchronous>, transform_indices = @transform_8, window_bounds = array<i64: 16, 64>}, {pipeline_mode = #tpu.pipeline_mode<synchronous>, transform_indices = @transform_9, window_bounds = array<i64: 1, 64>}, {pipeline_mode = #tpu.pipeline_mode<synchronous>, transform_indices = @transform_10, window_bounds = array<i64: 64, 64>}, {pipeline_mode = #tpu.pipeline_mode<synchronous>, transform_indices = @transform_11, window_bounds = array<i64: 1, 64>}, {pipeline_mode = #tpu.pipeline_mode<synchronous>, transform_indices = @transform_12, window_bounds = array<i64: 64, 896>}, {pipeline_mode = #tpu.pipeline_mode<synchronous>, transform_indices = @transform_13, window_bounds = array<i64: 1, 896>}, {transform_indices = @transform_14, window_bounds = array<i64: 8, 896>}, {transform_indices = @transform_15, window_bounds = array<i64: 8, 32>}]} {
    %c0 = arith.constant 0 : index
    %c0_0 = arith.constant 0 : index
    %0 = vector.load %arg1[%c0, %c0_0] : memref<8x896xf32, #tpu.memory_space<vmem>>, vector<8x896xf32>
    %c0_1 = arith.constant 0 : index
    %c0_2 = arith.constant 0 : index
    %1 = vector.load %arg3[%c0_1, %c0_2] : memref<896x64xf32, #tpu.memory_space<vmem>>, vector<896x64xf32>
    %cst = arith.constant dense<0.000000e+00> : vector<8x64xf32>
    %2 = tpu.matmul %0, %1, %cst {dimension_numbers = #tpu.dot_dimension_numbers<[1], [0], [0], [1], [0, 0, 1, 1], [], []>} : vector<8x896xf32>, vector<896x64xf32>, vector<8x64xf32> -> vector<8x64xf32>
    %c0_3 = arith.constant 0 : index
    %c0_4 = arith.constant 0 : index
    %3 = vector.load %arg4[%c0_3, %c0_4] : memref<1x64xf32, #tpu.memory_space<vmem>>, vector<1x64xf32>
    %4 = vector.broadcast %3 : vector<1x64xf32> to vector<8x64xf32>
    %5 = arith.addf %2, %4 : vector<8x64xf32>
    %cst_5 = arith.constant 0.000000e+00 : f32
    %6 = vector.broadcast %cst_5 : f32 to vector<8x64xf32>
    %7 = arith.cmpf ogt, %5, %6 : vector<8x64xf32>
    %cst_6 = arith.constant 2.000000e-01 : f32
    %8 = vector.broadcast %cst_6 : f32 to vector<8x64xf32>
    %9 = arith.mulf %8, %5 : vector<8x64xf32>
    %10 = arith.select %7, %5, %9 : vector<8x64xi1>, vector<8x64xf32>
    %c0_7 = arith.constant 0 : index
    %c0_8 = arith.constant 0 : index
    %11 = vector.load %arg5[%c0_7, %c0_8] : memref<64x64xf32, #tpu.memory_space<vmem>>, vector<64x64xf32>
    %cst_9 = arith.constant dense<0.000000e+00> : vector<8x64xf32>
    %12 = tpu.matmul %10, %11, %cst_9 {dimension_numbers = #tpu.dot_dimension_numbers<[1], [0], [0], [1], [0, 0, 1, 1], [], []>} : vector<8x64xf32>, vector<64x64xf32>, vector<8x64xf32> -> vector<8x64xf32>
    %c0_10 = arith.constant 0 : index
    %c0_11 = arith.constant 0 : index
    %13 = vector.load %arg6[%c0_10, %c0_11] : memref<1x64xf32, #tpu.memory_space<vmem>>, vector<1x64xf32>
    %14 = vector.broadcast %13 : vector<1x64xf32> to vector<8x64xf32>
    %15 = arith.addf %12, %14 : vector<8x64xf32>
    %cst_12 = arith.constant 0.000000e+00 : f32
    %16 = vector.broadcast %cst_12 : f32 to vector<8x64xf32>
    %17 = arith.cmpf ogt, %15, %16 : vector<8x64xf32>
    %cst_13 = arith.constant 2.000000e-01 : f32
    %18 = vector.broadcast %cst_13 : f32 to vector<8x64xf32>
    %19 = arith.mulf %18, %15 : vector<8x64xf32>
    %20 = arith.select %17, %15, %19 : vector<8x64xi1>, vector<8x64xf32>
    %c0_14 = arith.constant 0 : index
    %c0_15 = arith.constant 0 : index
    %21 = vector.load %arg7[%c0_14, %c0_15] : memref<64x32xf32, #tpu.memory_space<vmem>>, vector<64x32xf32>
    %cst_16 = arith.constant dense<0.000000e+00> : vector<8x32xf32>
    %22 = tpu.matmul %20, %21, %cst_16 {dimension_numbers = #tpu.dot_dimension_numbers<[1], [0], [0], [1], [0, 0, 1, 1], [], []>} : vector<8x64xf32>, vector<64x32xf32>, vector<8x32xf32> -> vector<8x32xf32>
    %c0_17 = arith.constant 0 : index
    %c0_18 = arith.constant 0 : index
    %23 = vector.load %arg8[%c0_17, %c0_18] : memref<1x32xf32, #tpu.memory_space<vmem>>, vector<1x32xf32>
    %24 = vector.broadcast %23 : vector<1x32xf32> to vector<8x32xf32>
    %25 = arith.addf %22, %24 : vector<8x32xf32>
    %26 = vector.extract_strided_slice %25 {offsets = [0, 0], sizes = [8, 16], strides = [1, 1]} : vector<8x32xf32> to vector<8x16xf32>
    %27 = vector.extract_strided_slice %25 {offsets = [0, 16], sizes = [8, 16], strides = [1, 1]} : vector<8x32xf32> to vector<8x16xf32>
    %cst_19 = arith.constant 5.000000e-01 : f32
    %28 = vector.broadcast %cst_19 : f32 to vector<8x16xf32>
    %29 = arith.mulf %28, %27 : vector<8x16xf32>
    %30 = math.exp %29 : vector<8x16xf32>
    %c0_20 = arith.constant 0 : index
    %c0_21 = arith.constant 0 : index
    %31 = vector.load %arg2[%c0_20, %c0_21] : memref<8x16xf32, #tpu.memory_space<vmem>>, vector<8x16xf32>
    %32 = arith.mulf %30, %31 : vector<8x16xf32>
    %33 = arith.addf %26, %32 : vector<8x16xf32>
    %c0_22 = arith.constant 0 : index
    %c0_23 = arith.constant 0 : index
    %34 = vector.load %arg9[%c0_22, %c0_23] : memref<16x64xf32, #tpu.memory_space<vmem>>, vector<16x64xf32>
    %cst_24 = arith.constant dense<0.000000e+00> : vector<8x64xf32>
    %35 = tpu.matmul %33, %34, %cst_24 {dimension_numbers = #tpu.dot_dimension_numbers<[1], [0], [0], [1], [0, 0, 1, 1], [], []>} : vector<8x16xf32>, vector<16x64xf32>, vector<8x64xf32> -> vector<8x64xf32>
    %c0_25 = arith.constant 0 : index
    %c0_26 = arith.constant 0 : index
    %36 = vector.load %arg10[%c0_25, %c0_26] : memref<1x64xf32, #tpu.memory_space<vmem>>, vector<1x64xf32>
    %37 = vector.broadcast %36 : vector<1x64xf32> to vector<8x64xf32>
    %38 = arith.addf %35, %37 : vector<8x64xf32>
    %cst_27 = arith.constant 0.000000e+00 : f32
    %39 = vector.broadcast %cst_27 : f32 to vector<8x64xf32>
    %40 = arith.cmpf ogt, %38, %39 : vector<8x64xf32>
    %cst_28 = arith.constant 2.000000e-01 : f32
    %41 = vector.broadcast %cst_28 : f32 to vector<8x64xf32>
    %42 = arith.mulf %41, %38 : vector<8x64xf32>
    %43 = arith.select %40, %38, %42 : vector<8x64xi1>, vector<8x64xf32>
    %c0_29 = arith.constant 0 : index
    %c0_30 = arith.constant 0 : index
    %44 = vector.load %arg11[%c0_29, %c0_30] : memref<64x64xf32, #tpu.memory_space<vmem>>, vector<64x64xf32>
    %cst_31 = arith.constant dense<0.000000e+00> : vector<8x64xf32>
    %45 = tpu.matmul %43, %44, %cst_31 {dimension_numbers = #tpu.dot_dimension_numbers<[1], [0], [0], [1], [0, 0, 1, 1], [], []>} : vector<8x64xf32>, vector<64x64xf32>, vector<8x64xf32> -> vector<8x64xf32>
    %c0_32 = arith.constant 0 : index
    %c0_33 = arith.constant 0 : index
    %46 = vector.load %arg12[%c0_32, %c0_33] : memref<1x64xf32, #tpu.memory_space<vmem>>, vector<1x64xf32>
    %47 = vector.broadcast %46 : vector<1x64xf32> to vector<8x64xf32>
    %48 = arith.addf %45, %47 : vector<8x64xf32>
    %cst_34 = arith.constant 0.000000e+00 : f32
    %49 = vector.broadcast %cst_34 : f32 to vector<8x64xf32>
    %50 = arith.cmpf ogt, %48, %49 : vector<8x64xf32>
    %cst_35 = arith.constant 2.000000e-01 : f32
    %51 = vector.broadcast %cst_35 : f32 to vector<8x64xf32>
    %52 = arith.mulf %51, %48 : vector<8x64xf32>
    %53 = arith.select %50, %48, %52 : vector<8x64xi1>, vector<8x64xf32>
    %c0_36 = arith.constant 0 : index
    %c0_37 = arith.constant 0 : index
    %54 = vector.load %arg13[%c0_36, %c0_37] : memref<64x896xf32, #tpu.memory_space<vmem>>, vector<64x896xf32>
    %cst_38 = arith.constant dense<0.000000e+00> : vector<8x896xf32>
    %55 = tpu.matmul %53, %54, %cst_38 {dimension_numbers = #tpu.dot_dimension_numbers<[1], [0], [0], [1], [0, 0, 1, 1], [], []>} : vector<8x64xf32>, vector<64x896xf32>, vector<8x896xf32> -> vector<8x896xf32>
    %c0_39 = arith.constant 0 : index
    %c0_40 = arith.constant 0 : index
    %56 = vector.load %arg14[%c0_39, %c0_40] : memref<1x896xf32, #tpu.memory_space<vmem>>, vector<1x896xf32>
    %57 = vector.broadcast %56 : vector<1x896xf32> to vector<8x896xf32>
    %58 = arith.addf %55, %57 : vector<8x896xf32>
    %59 = arith.negf %58 : vector<8x896xf32>
    %60 = math.exp %59 : vector<8x896xf32>
    %cst_41 = arith.constant 1.000000e+00 : f32
    %61 = vector.broadcast %cst_41 : f32 to vector<8x896xf32>
    %62 = arith.addf %61, %60 : vector<8x896xf32>
    %63 = arith.divf %61, %62 : vector<8x896xf32>
    %c0_42 = arith.constant 0 : index
    %c0_43 = arith.constant 0 : index
    %64 = vector.load %arg15[%c0_42, %c0_43] : memref<8x896xf32, #tpu.memory_space<vmem>>, vector<8x896xf32>
    tpu.vector_store %arg15[%c0_42, %c0_43], %63 {strides = array<i32>} : memref<8x896xf32, #tpu.memory_space<vmem>>, vector<8x896xf32>,
    %c0_44 = arith.constant 0 : index
    %c0_45 = arith.constant 0 : index
    %65 = vector.load %arg16[%c0_44, %c0_45] : memref<8x32xf32, #tpu.memory_space<vmem>>, vector<8x32xf32>
    tpu.vector_store %arg16[%c0_44, %c0_45], %25 {strides = array<i32>} : memref<8x32xf32, #tpu.memory_space<vmem>>, vector<8x32xf32>,
    return
  }
  func.func @transform_0(%arg0: i32) -> (i32, i32) {
    %c0_i32 = arith.constant 0 : i32
    %c0_i32_0 = arith.constant 0 : i32
    return %arg0, %c0_i32 : i32, i32
  }
  func.func @transform_1(%arg0: i32) -> (i32, i32) {
    %c0_i32 = arith.constant 0 : i32
    %c0_i32_0 = arith.constant 0 : i32
    return %arg0, %c0_i32 : i32, i32
  }
  func.func @transform_2(%arg0: i32) -> (i32, i32) {
    %c0_i32 = arith.constant 0 : i32
    %c0_i32_0 = arith.constant 0 : i32
    %c0_i32_1 = arith.constant 0 : i32
    return %c0_i32, %c0_i32_0 : i32, i32
  }
  func.func @transform_3(%arg0: i32) -> (i32, i32) {
    %c0_i32 = arith.constant 0 : i32
    %c0_i32_0 = arith.constant 0 : i32
    %c0_i32_1 = arith.constant 0 : i32
    return %c0_i32, %c0_i32_0 : i32, i32
  }
  func.func @transform_4(%arg0: i32) -> (i32, i32) {
    %c0_i32 = arith.constant 0 : i32
    %c0_i32_0 = arith.constant 0 : i32
    %c0_i32_1 = arith.constant 0 : i32
    return %c0_i32, %c0_i32_0 : i32, i32
  }
  func.func @transform_5(%arg0: i32) -> (i32, i32) {
    %c0_i32 = arith.constant 0 : i32
    %c0_i32_0 = arith.constant 0 : i32
    %c0_i32_1 = arith.constant 0 : i32
    return %c0_i32, %c0_i32_0 : i32, i32
  }
  func.func @transform_6(%arg0: i32) -> (i32, i32) {
    %c0_i32 = arith.constant 0 : i32
    %c0_i32_0 = arith.constant 0 : i32
    %c0_i32_1 = arith.constant 0 : i32
    return %c0_i32, %c0_i32_0 : i32, i32
  }
  func.func @transform_7(%arg0: i32) -> (i32, i32) {
    %c0_i32 = arith.constant 0 : i32
    %c0_i32_0 = arith.constant 0 : i32
    %c0_i32_1 = arith.constant 0 : i32
    return %c0_i32, %c0_i32_0 : i32, i32
  }
  func.func @transform_8(%arg0: i32) -> (i32, i32) {
    %c0_i32 = arith.constant 0 : i32
    %c0_i32_0 = arith.constant 0 : i32
    %c0_i32_1 = arith.constant 0 : i32
    return %c0_i32, %c0_i32_0 : i32, i32
  }
  func.func @transform_9(%arg0: i32) -> (i32, i32) {
    %c0_i32 = arith.constant 0 : i32
    %c0_i32_0 = arith.constant 0 : i32
    %c0_i32_1 = arith.constant 0 : i32
    return %c0_i32, %c0_i32_0 : i32, i32
  }
  func.func @transform_10(%arg0: i32) -> (i32, i32) {
    %c0_i32 = arith.constant 0 : i32
    %c0_i32_0 = arith.constant 0 : i32
    %c0_i32_1 = arith.constant 0 : i32
    return %c0_i32, %c0_i32_0 : i32, i32
  }
  func.func @transform_11(%arg0: i32) -> (i32, i32) {
    %c0_i32 = arith.constant 0 : i32
    %c0_i32_0 = arith.constant 0 : i32
    %c0_i32_1 = arith.constant 0 : i32
    return %c0_i32, %c0_i32_0 : i32, i32
  }
  func.func @transform_12(%arg0: i32) -> (i32, i32) {
    %c0_i32 = arith.constant 0 : i32
    %c0_i32_0 = arith.constant 0 : i32
    %c0_i32_1 = arith.constant 0 : i32
    return %c0_i32, %c0_i32_0 : i32, i32
  }
  func.func @transform_13(%arg0: i32) -> (i32, i32) {
    %c0_i32 = arith.constant 0 : i32
    %c0_i32_0 = arith.constant 0 : i32
    %c0_i32_1 = arith.constant 0 : i32
    return %c0_i32, %c0_i32_0 : i32, i32
  }
  func.func @transform_14(%arg0: i32) -> (i32, i32) {
    %c0_i32 = arith.constant 0 : i32
    %c0_i32_0 = arith.constant 0 : i32
    return %arg0, %c0_i32 : i32, i32
  }
  func.func @transform_15(%arg0: i32) -> (i32, i32) {
    %c0_i32 = arith.constant 0 : i32
    %c0_i32_0 = arith.constant 0 : i32
    return %arg0, %c0_i32 : i32, i32
  }
}

</mosaic_0001>

<bundles_post_ra>
// kernel: vae_forward.1
= control target key start
LH: loop header
LB: loop body
LE: loop exit
PB: predicated region body
PF: predicated region fallthrough
CT: control target
= control target key end

     0   :  { %vm327_vm1 = vcmask 523264   ;;  %s894_s16 = smov 16   ;;  %vm829_vm3 = vcmask 261120   ;;  %vm409_vm4 = vcmask 130048   ;;  %s1671_s2 = inlined_call_operand.vmem [shape: f32[896,64], index: 2, kind: input, shape index: {}]   ;;  %s1672_s3 = inlined_call_operand.vmem [shape: f32[1,64], index: 3, kind: input, shape index: {}]   ;;  %s1673_s0 = inlined_call_operand.vmem [shape: f32[8,896], index: 0, kind: input, shape index: {}]   ;;  %s1674_s5 = inlined_call_operand.vmem [shape: f32[1,64], index: 5, kind: input, shape index: {}]   ;;  %s1675_s4 = inlined_call_operand.vmem [shape: f32[64,64], index: 4, kind: input, shape index: {}]   ;;  %s1676_s6 = inlined_call_operand.vmem [shape: f32[64,32], index: 6, kind: input, shape index: {}]   ;;  %s1677_s7 = inlined_call_operand.vmem [shape: f32[1,32], index: 7, kind: input, shape index: {}]   ;;  %s1678_s1 = inlined_call_operand.vmem [shape: f32[8,16], index: 1, kind: input, shape index: {}]   ;;  %s1679_s8 = inlined_call_operand.vmem [shape: f32[16,64], index: 8, kind: input, shape index: {}]   ;;  %s1680_s15 = inlined_call_operand.vmem [shape: f32[8,32], index: 15, kind: output, shape index: {1}]   ;;  %s1681_s9 = inlined_call_operand.vmem [shape: f32[1,64], index: 9, kind: input, shape index: {}]   ;;  %s1682_s10 = inlined_call_operand.vmem [shape: f32[64,64], index: 10, kind: input, shape index: {}]   ;;  %s1683_s11 = inlined_call_operand.vmem [shape: f32[1,64], index: 11, kind: input, shape index: {}]   ;;  %s1684_s12 = inlined_call_operand.vmem [shape: f32[64,896], index: 12, kind: input, shape index: {}]   ;;  %s1685_s13 = inlined_call_operand.vmem [shape: f32[1,896], index: 13, kind: input, shape index: {}]   ;;  %s1686_s14 = inlined_call_operand.vmem [shape: f32[8,896], index: 14, kind: output, shape index: {0}]  }
   0x1   :  { %v103_v0 = vld [vmem:[%s1671_s2 + $0x178] sm:$0xff]  ;;  %v102_v2 = vld [vmem:[%s1671_s2 + $0x170] sm:$0xff]  ;;  %v101_v5 = vld [vmem:[%s1671_s2 + $0x168] sm:$0xff] }
   0x2   :  { %v71_v1 = vld [vmem:[%s1671_s2 + $0x78] sm:$0xff]  ;;  %212 = vmatpush.msra.mxu2 %v103_v0  ;;  %v70_v3 = vld [vmem:[%s1671_s2 + $0x70] sm:$0xff]  ;;  %v69_v6 = vld [vmem:[%s1671_s2 + $0x68] sm:$0xff] }
   0x3   :  { %172 = vmatpush.msra.mxu0 %v71_v1  ;;  %v87_v4 = vld [vmem:[%s1671_s2 + $0xf8] sm:$0xff]  ;;  %v86_v7 = vld [vmem:[%s1671_s2 + $0xf0] sm:$0xff]  ;;  %v85_v8 = vld [vmem:[%s1671_s2 + $0xe8] sm:$0xff] }
   0x4   :  { %192 = vmatpush.msra.mxu1 %v87_v4  ;;  %213 = vmatpush.msra.mxu2 %v102_v2  ;;  %v100_v9 = vld [vmem:[%s1671_s2 + $0x160] sm:$0xff]  ;;  %v99_v12 = vld [vmem:[%s1671_s2 + $0x158] sm:$0xff]  ;;  %v98_v15 = vld [vmem:[%s1671_s2 + $0x150] sm:$0xff] }
   0x5   :  { %173 = vmatpush.msra.mxu0 %v70_v3  ;;  %v68_v10 = vld [vmem:[%s1671_s2 + $0x60] sm:$0xff]  ;;  %v67_v13 = vld [vmem:[%s1671_s2 + $0x58] sm:$0xff]  ;;  %v66_v16 = vld [vmem:[%s1671_s2 + $0x50] sm:$0xff] }
   0x6   :  { %193 = vmatpush.msra.mxu1 %v86_v7  ;;  %214 = vmatpush.msra.mxu2 %v101_v5  ;;  %v84_v11 = vld [vmem:[%s1671_s2 + $0xe0] sm:$0xff]  ;;  %v83_v14 = vld [vmem:[%s1671_s2 + $0xd8] sm:$0xff]  ;;  %v82_v17 = vld [vmem:[%s1671_s2 + $0xd0] sm:$0xff] }
   0x7   :  { %174 = vmatpush.msra.mxu0 %v69_v6  ;;  %v97_v18 = vld [vmem:[%s1671_s2 + $0x148] sm:$0xff]  ;;  %v96_v21 = vld [vmem:[%s1671_s2 + $0x140] sm:$0xff]  ;;  %v119_v23 = vld [vmem:[%s1671_s2 + $0x1f8] sm:$0xff] }
   0x8   :  { %194 = vmatpush.msra.mxu1 %v85_v8  ;;  %215 = vmatpush.msra.mxu2 %v100_v9  ;;  %v65_v19 = vld [vmem:[%s1671_s2 + $0x48] sm:$0xff]  ;;  %v64_v22 = vld [vmem:[%s1671_s2 + $0x40] sm:$0xff]  ;;  %v118_v25 = vld [vmem:[%s1671_s2 + $0x1f0] sm:$0xff] }
   0x9   :  { %175 = vmatpush.msra.mxu0 %v68_v10  ;;  %v81_v20 = vld [vmem:[%s1671_s2 + $0xc8] sm:$0xff]  ;;  %v80_v24 = vld [vmem:[%s1671_s2 + $0xc0] sm:$0xff]  ;;  %v95_v26 = vld [vmem:[%s1671_s2 + $0x138] sm:$0xff]  ;;  %232 = vmatpush.msra.mxu3 %v119_v23 }
   0xa   :  { %195 = vmatpush.msra.mxu1 %v84_v11  ;;  %216 = vmatpush.msra.mxu2 %v99_v12  ;;  %v63_v27 = vld [vmem:[%s1671_s2 + $0x38] sm:$0xff]  ;;  %v117_v29 = vld [vmem:[%s1671_s2 + $0x1e8] sm:$0xff]  ;;  %v94_v30 = vld [vmem:[%s1671_s2 + $0x130] sm:$0xff] }
   0xb   :  { %176 = vmatpush.msra.mxu0 %v67_v13  ;;  %v79_v28 = vld [vmem:[%s1671_s2 + $0xb8] sm:$0xff]  ;;  %v62_v31 = vld [vmem:[%s1671_s2 + $0x30] sm:$0xff]  ;;  %233 = vmatpush.msra.mxu3 %v118_v25  ;;  %v116_v33 = vld [vmem:[%s1671_s2 + $0x1e0] sm:$0xff] }
   0xc   :  { %196 = vmatpush.msra.mxu1 %v83_v14  ;;  %217 = vmatpush.msra.mxu2 %v98_v15  ;;  %v78_v32 = vld [vmem:[%s1671_s2 + $0xb0] sm:$0xff]  ;;  %v93_v34 = vld [vmem:[%s1671_s2 + $0x128] sm:$0xff]  ;;  %v115_v37 = vld [vmem:[%s1671_s2 + $0x1d8] sm:$0xff] }
   0xd   :  { %177 = vmatpush.msra.mxu0 %v66_v16  ;;  %v61_v35 = vld [vmem:[%s1671_s2 + $0x28] sm:$0xff]  ;;  %234 = vmatpush.msra.mxu3 %v117_v29  ;;  %v92_v38 = vld [vmem:[%s1671_s2 + $0x120] sm:$0xff]  ;;  %v114_v41 = vld [vmem:[%s1671_s2 + $0x1d0] sm:$0xff] }
   0xe   :  { %197 = vmatpush.msra.mxu1 %v82_v17  ;;  %218 = vmatpush.msra.mxu2 %v97_v18  ;;  %v77_v36 = vld [vmem:[%s1671_s2 + $0xa8] sm:$0xff]  ;;  %v60_v39 = vld [vmem:[%s1671_s2 + $0x20] sm:$0xff]  ;;  %v91_v42 = vld [vmem:[%s1671_s2 + $0x118] sm:$0xff] }
   0xf   :  { %178 = vmatpush.msra.mxu0 %v65_v19  ;;  %235 = vmatpush.msra.mxu3 %v116_v33  ;;  %v76_v40 = vld [vmem:[%s1671_s2 + $0xa0] sm:$0xff]  ;;  %v59_v43 = vld [vmem:[%s1671_s2 + $0x18] sm:$0xff]  ;;  %v113_v45 = vld [vmem:[%s1671_s2 + $0x1c8] sm:$0xff] }
  0x10   :  { %198 = vmatpush.msra.mxu1 %v81_v20  ;;  %219 = vmatpush.msra.mxu2 %v96_v21  ;;  %v75_v44 = vld [vmem:[%s1671_s2 + $0x98] sm:$0xff]  ;;  %v90_v46 = vld [vmem:[%s1671_s2 + $0x110] sm:$0xff]  ;;  %v112_v49 = vld [vmem:[%s1671_s2 + $0x1c0] sm:$0xff] }
  0x11   :  { %179 = vmatpush.msra.mxu0 %v64_v22  ;;  %236 = vmatpush.msra.mxu3 %v115_v37  ;;  %v58_v47 = vld [vmem:[%s1671_s2 + $0x10] sm:$0xff]  ;;  %v89_v50 = vld [vmem:[%s1671_s2 + $0x108] sm:$0xff]  ;;  %v111_v53 = vld [vmem:[%s1671_s2 + $0x1b8] sm:$0xff] }
  0x12   :  { %199 = vmatpush.msra.mxu1 %v80_v24  ;;  %220 = vmatpush.msra.mxu2 %v95_v26  ;;  %v74_v48 = vld [vmem:[%s1671_s2 + $0x90] sm:$0xff]  ;;  %v57_v51 = vld [vmem:[%s1671_s2 + $0x8] sm:$0xff]  ;;  %v88_v54 = vld [vmem:[%s1671_s2 + $0x100] sm:$0xff] }
  0x13   :  { %180 = vmatpush.msra.mxu0 %v63_v27  ;;  %237 = vmatpush.msra.mxu3 %v114_v41  ;;  %v73_v52 = vld [vmem:[%s1671_s2 + $0x88] sm:$0xff]  ;;  %v56_v55 = vld [vmem:[%s1671_s2] sm:$0xff]  ;;  %v167_v56 = vld [vmem:[%s1671_s2 + $0x378] sm:$0xff] }
  0x14   :  { %200 = vmatpush.msra.mxu1 %v79_v28  ;;  %221 = vmatpush.msra.mxu2 %v94_v30  ;;  %v135_v57 = vld [vmem:[%s1671_s2 + $0x278] sm:$0xff]  ;;  %v72_v58 = vld [vmem:[%s1671_s2 + $0x80] sm:$0xff]  ;;  %v110_v59 = vld [vmem:[%s1671_s2 + $0x1b0] sm:$0xff] }
  0x15   :  { %181 = vmatpush.msra.mxu0 %v62_v31  ;;  %238 = vmatpush.msra.mxu3 %v113_v45  ;;  %v166_v60 = vld [vmem:[%s1671_s2 + $0x370] sm:$0xff]  ;;  %v151_v62 = vld [vmem:[%s1671_s2 + $0x2f8] sm:$0xff]  ;;  %v109_v63 = vld [vmem:[%s1671_s2 + $0x1a8] sm:$0xff] }
  0x16   :  { %201 = vmatpush.msra.mxu1 %v78_v32  ;;  %222 = vmatpush.msra.mxu2 %v93_v34  ;;  %v134_v61 = vld [vmem:[%s1671_s2 + $0x270] sm:$0xff]  ;;  %v165_v0 = vld [vmem:[%s1671_s2 + $0x368] sm:$0xff]  ;;  %v108_v3 = vld [vmem:[%s1671_s2 + $0x1a0] sm:$0xff] }
  0x17   :  { %182 = vmatpush.msra.mxu0 %v61_v35  ;;  %239 = vmatpush.msra.mxu3 %v112_v49  ;;  %v133_v1 = vld [vmem:[%s1671_s2 + $0x268] sm:$0xff]  ;;  %v150_v2 = vld [vmem:[%s1671_s2 + $0x2f0] sm:$0xff]  ;;  %v164_v4 = vld [vmem:[%s1671_s2 + $0x360] sm:$0xff] }
  0x18   :  { %202 = vmatpush.msra.mxu1 %v77_v36  ;;  %223 = vmatpush.msra.mxu2 %v92_v38  ;;  %v132_v5 = vld [vmem:[%s1671_s2 + $0x260] sm:$0xff]  ;;  %v149_v6 = vld [vmem:[%s1671_s2 + $0x2e8] sm:$0xff]  ;;  %v107_v7 = vld [vmem:[%s1671_s2 + $0x198] sm:$0xff] }
  0x19   :  { %183 = vmatpush.msra.mxu0 %v60_v39  ;;  %240 = vmatpush.msra.mxu3 %v111_v53  ;;  %v163_v8 = vld [vmem:[%s1671_s2 + $0x358] sm:$0xff]  ;;  %v148_v10 = vld [vmem:[%s1671_s2 + $0x2e0] sm:$0xff]  ;;  %v106_v11 = vld [vmem:[%s1671_s2 + $0x190] sm:$0xff] }
  0x1a   :  { %203 = vmatpush.msra.mxu1 %v76_v40  ;;  %224 = vmatpush.msra.mxu2 %v91_v42  ;;  %v131_v9 = vld [vmem:[%s1671_s2 + $0x258] sm:$0xff]  ;;  %v162_v12 = vld [vmem:[%s1671_s2 + $0x350] sm:$0xff]  ;;  %v105_v15 = vld [vmem:[%s1671_s2 + $0x188] sm:$0xff] }
  0x1b   :  { %184 = vmatpush.msra.mxu0 %v59_v43  ;;  %241 = vmatpush.msra.mxu3 %v110_v59  ;;  %v130_v13 = vld [vmem:[%s1671_s2 + $0x250] sm:$0xff]  ;;  %v147_v14 = vld [vmem:[%s1671_s2 + $0x2d8] sm:$0xff]  ;;  %v161_v16 = vld [vmem:[%s1671_s2 + $0x348] sm:$0xff] }
  0x1c   :  { %204 = vmatpush.msra.mxu1 %v75_v44  ;;  %225 = vmatpush.msra.mxu2 %v90_v46  ;;  %v129_v17 = vld [vmem:[%s1671_s2 + $0x248] sm:$0xff]  ;;  %v146_v18 = vld [vmem:[%s1671_s2 + $0x2d0] sm:$0xff]  ;;  %v160_v20 = vld [vmem:[%s1671_s2 + $0x340] sm:$0xff] }
  0x1d   :  { %185 = vmatpush.msra.mxu0 %v58_v47  ;;  %242 = vmatpush.msra.mxu3 %v109_v63  ;;  %v51_v19 = vld [vmem:[%s1673_s0 + $0x10] sm:$0xff]  ;;  %v128_v21 = vld [vmem:[%s1671_s2 + $0x240] sm:$0xff]  ;;  %v145_v22 = vld [vmem:[%s1671_s2 + $0x2c8] sm:$0xff] }
  0x1e   :  { %205 = vmatpush.msra.mxu1 %v74_v48  ;;  %226 = vmatpush.msra.mxu2 %v89_v50  ;;  %v104_v23 = vld [vmem:[%s1671_s2 + $0x180] sm:$0xff]  ;;  %v159_v24 = vld [vmem:[%s1671_s2 + $0x338] sm:$0xff]  ;;  %v158_v28 = vld [vmem:[%s1671_s2 + $0x330] sm:$0xff] }
  0x1f   :  { %186 = vmatpush.msra.mxu0 %v57_v51  ;;  %243 = vmatpush.msra.mxu3 %v108_v3  ;;  %v127_v25 = vld [vmem:[%s1671_s2 + $0x238] sm:$0xff]  ;;  %v144_v26 = vld [vmem:[%s1671_s2 + $0x2c0] sm:$0xff]  ;;  %v126_v29 = vld [vmem:[%s1671_s2 + $0x230] sm:$0xff] }
  0x20   :  { %206 = vmatpush.msra.mxu1 %v73_v52  ;;  %227 = vmatpush.msra.mxu2 %v88_v54  ;;  %v49_v27 = vld [vmem:[%s1673_s0] sm:$0xff]  ;;  %v143_v30 = vld [vmem:[%s1671_s2 + $0x2b8] sm:$0xff]  ;;  %v157_v32 = vld [vmem:[%s1671_s2 + $0x328] sm:$0xff] }
  0x21   :  { %187 = vmatpush.msra.mxu0 %v56_v55  ;;  %244 = vmatpush.msra.mxu3 %v107_v7  ;;  %v52_v31 = vld [vmem:[%s1673_s0 + $0x18] sm:$0xff]  ;;  %v125_v33 = vld [vmem:[%s1671_s2 + $0x228] sm:$0xff]  ;;  %v142_v34 = vld [vmem:[%s1671_s2 + $0x2b0] sm:$0xff] }
  0x22   :  { %292 = vmatpush.msrb.mxu2 %v167_v56  ;;  %207 = vmatpush.msra.mxu1 %v72_v58  ;;  %v156_v35 = vld [vmem:[%s1671_s2 + $0x320] sm:$0xff]  ;;  %v141_v37 = vld [vmem:[%s1671_s2 + $0x2a8] sm:$0xff]  ;;  %v155_v38 = vld [vmem:[%s1671_s2 + $0x318] sm:$0xff] }
  0x23   :  { %252 = vmatpush.msrb.mxu0 %v135_v57  ;;  %245 = vmatpush.msra.mxu3 %v106_v11  ;;  %v124_v36 = vld [vmem:[%s1671_s2 + $0x220] sm:$0xff]  ;;  %v123_v39 = vld [vmem:[%s1671_s2 + $0x218] sm:$0xff]  ;;  %v154_v41 = vld [vmem:[%s1671_s2 + $0x310] sm:$0xff] }
  0x24   :  { %293 = vmatpush.msrb.mxu2 %v166_v60  ;;  %272 = vmatpush.msrb.mxu1 %v151_v62  ;;  %v140_v40 = vld [vmem:[%s1671_s2 + $0x2a0] sm:$0xff]  ;;  %v50_v42 = vld [vmem:[%s1673_s0 + $0x8] sm:$0xff]  ;;  %v122_v43 = vld [vmem:[%s1671_s2 + $0x210] sm:$0xff] }
  0x25   :  { %253 = vmatpush.msrb.mxu0 %v134_v61  ;;  %246 = vmatpush.msra.mxu3 %v105_v15  ;;  %v139_v44 = vld [vmem:[%s1671_s2 + $0x298] sm:$0xff]  ;;  %v153_v45 = vld [vmem:[%s1671_s2 + $0x308] sm:$0xff]  ;;  %v138_v47 = vld [vmem:[%s1671_s2 + $0x290] sm:$0xff] }
  0x26   :  { %294 = vmatpush.msrb.mxu2 %v165_v0  ;;  %273 = vmatpush.msrb.mxu1 %v150_v2  ;;  %v121_v46 = vld [vmem:[%s1671_s2 + $0x208] sm:$0xff]  ;;  %v152_v48 = vld [vmem:[%s1671_s2 + $0x300] sm:$0xff]  ;;  %v55_v49 = vld [vmem:[%s1673_s0 + $0x30] sm:$0xff] }
  0x27   :  { %254 = vmatpush.msrb.mxu0 %v133_v1  ;;  %228 = vmatmul.f32.vlgmr.msra.gmra.mxu2 %v51_v19  ;;  %v120_v50 = vld [vmem:[%s1671_s2 + $0x200] sm:$0xff]  ;;  %v137_v51 = vld [vmem:[%s1671_s2 + $0x288] sm:$0xff]  ;;  %v322_v55 = vld [vmem:[%s1675_s4 + $0x38] sm:$0xff] }
  0x28   :  { %295 = vmatpush.msrb.mxu2 %v164_v4  ;;  %274 = vmatpush.msrb.mxu1 %v149_v6  ;;  %v53_v52 = vld [vmem:[%s1673_s0 + $0x20] sm:$0xff]  ;;  %v54_v54 = vld [vmem:[%s1673_s0 + $0x28] sm:$0xff]  ;;  %v321_v56 = vld [vmem:[%s1675_s4 + $0x30] sm:$0xff] }
  0x29   :  { %255 = vmatpush.msrb.mxu0 %v132_v5  ;;  %247 = vmatpush.msra.mxu3 %v104_v23  ;;  %v136_v53 = vld [vmem:[%s1671_s2 + $0x280] sm:$0xff]  ;;  %v320_v57 = vld [vmem:[%s1675_s4 + $0x28] sm:$0xff]  ;;  %v318_v59 = vld [vmem:[%s1675_s4 + $0x18] sm:$0xff] }
  0x2a   :  { %296 = vmatpush.msrb.mxu2 %v163_v8  ;;  %275 = vmatpush.msrb.mxu1 %v148_v10  ;;  %v319_v58 = vld [vmem:[%s1675_s4 + $0x20] sm:$0xff]  ;;  %v317_v60 = vld [vmem:[%s1675_s4 + $0x10] sm:$0xff]  ;;  %v316_v61 = vld [vmem:[%s1675_s4 + $0x8] sm:$0xff] }
  0x2b   :  { %256 = vmatpush.msrb.mxu0 %v131_v9  ;;  %248 = vmatmul.f32.vlgmr.msra.gmra.mxu3 %v52_v31  ;;  %v315_v62 = vld [vmem:[%s1675_s4] sm:$0xff]  ;;  %v361_v63 = vld [vmem:[%s1676_s6 + $0x38] sm:$0xff]  ;;  %v360_v0 = vld [vmem:[%s1676_s6 + $0x30] sm:$0xff] }
  0x2c   :  { %297 = vmatpush.msrb.mxu2 %v162_v12  ;;  %276 = vmatpush.msrb.mxu1 %v147_v14  ;;  %v359_v1 = vld [vmem:[%s1676_s6 + $0x28] sm:$0xff]  ;;  %v358_v2 = vld [vmem:[%s1676_s6 + $0x20] sm:$0xff]  ;;  %v357_v3 = vld [vmem:[%s1676_s6 + $0x18] sm:$0xff] }
  0x2d   :  { %257 = vmatpush.msrb.mxu0 %v130_v13  ;;  %208 = vmatmul.f32.vlgmr.msra.gmra.mxu1 %v50_v42  ;;  %v859_v4 = vld [vmem:[%s1672_s3] ss:$0 sm:$0xff]  ;;  %v441_v42 = vld [vmem:[%s1682_s10 + $0x28] sm:$0xff] }
  0x2e   :  { %298 = vmatpush.msrb.mxu2 %v161_v16  ;;  %277 = vmatpush.msrb.mxu1 %v146_v18  ;;  %v354_v23 = vld [vmem:[%s1676_s6] sm:$0xff] }
  0x2f   :  { %258 = vmatpush.msrb.mxu0 %v129_v17  ;;  %339 = vmatpush.msrb.mxu3 %v322_v55  ;;  %v403_v31 = vld [vmem:[%s1679_s8] sm:$0xff] }
  0x30   :  { %299 = vmatpush.msrb.mxu2 %v160_v20  ;;  %278 = vmatpush.msrb.mxu1 %v145_v22  ;;  %v355_v22 = vld [vmem:[%s1676_s6 + $0x8] sm:$0xff]  ;;  %v518_v55 = vld [vmem:[%s1684_s12 + $0x160] sm:$0xff] }
  0x31   :  { %259 = vmatpush.msrb.mxu0 %v128_v21  ;;  %340 = vmatpush.msrb.mxu3 %v321_v56  ;;  %v356_v21 = vld [vmem:[%s1676_s6 + $0x10] sm:$0xff]  ;;  %v509_v56 = vld [vmem:[%s1684_s12 + $0x118] sm:$0xff] }
  0x32   :  { %300 = vmatpush.msrb.mxu2 %v159_v24  ;;  %279 = vmatpush.msrb.mxu1 %v144_v26  ;;  %v392_v24 = vld [vmem:[%s1678_s1] sm:$0xff] }
  0x33   :  { %260 = vmatpush.msrb.mxu0 %v127_v25  ;;  %341 = vmatpush.msrb.mxu3 %v320_v57  ;;  %v860_v25 = vld [vmem:[%s1674_s5] ss:$0 sm:$0xff] }
  0x34   :  { %188 = vmatmul.f32.vlgmr.msra.gmra.mxu0 %v49_v27  ;;  %301 = vmatpush.msrb.mxu2 %v158_v28  ;;  %v510_v57 = vld [vmem:[%s1684_s12 + $0x120] sm:$0xff] }
  0x35   :  { %261 = vmatpush.msrb.mxu0 %v126_v29  ;;  %280 = vmatpush.msrb.mxu1 %v143_v30  ;;  %v404_v30 = vld [vmem:[%s1679_s8 + $0x8] sm:$0xff]  ;;  %s895_s8 = smov 112  }
  0x36   :  { %302 = vmatpush.msrb.mxu2 %v157_v32  ;;  %342 = vmatpush.msrb.mxu3 %v319_v58  ;;  %v861_v32 = vld [vmem:[%s1677_s7] ss:$0 sm:$0xff]  ;;  %v511_v58 = vld [vmem:[%s1684_s12 + $0x128] sm:$0xff] }
  0x37   :  { %262 = vmatpush.msrb.mxu0 %v125_v33  ;;  %281 = vmatpush.msrb.mxu1 %v142_v34 }
  0x38   :  { %303 = vmatpush.msrb.mxu2 %v156_v35  ;;  %343 = vmatpush.msrb.mxu3 %v318_v59  ;;  %v502_v59 = vld [vmem:[%s1684_s12 + $0xe0] sm:$0xff] }
  0x39   :  { %263 = vmatpush.msrb.mxu0 %v124_v36  ;;  %282 = vmatpush.msrb.mxu1 %v141_v37 }
  0x3a   :  { %304 = vmatpush.msrb.mxu2 %v155_v38  ;;  %344 = vmatpush.msrb.mxu3 %v317_v60  ;;  %v503_v60 = vld [vmem:[%s1684_s12 + $0xe8] sm:$0xff] }
  0x3b   :  { %264 = vmatpush.msrb.mxu0 %v123_v39  ;;  %283 = vmatpush.msrb.mxu1 %v140_v40  ;;  %v443_v40 = vld [vmem:[%s1682_s10 + $0x38] sm:$0xff] }
  0x3c   :  { %305 = vmatpush.msrb.mxu2 %v154_v41  ;;  %345 = vmatpush.msrb.mxu3 %v316_v61  ;;  %v442_v41 = vld [vmem:[%s1682_s10 + $0x30] sm:$0xff]  ;;  %v526_v61 = vld [vmem:[%s1684_s12 + $0x1a0] sm:$0xff] }
  0x3d   :  { %265 = vmatpush.msrb.mxu0 %v122_v43  ;;  %284 = vmatpush.msrb.mxu1 %v139_v44  ;;  %v440_v43 = vld [vmem:[%s1682_s10 + $0x20] sm:$0xff]  ;;  %v439_v44 = vld [vmem:[%s1682_s10 + $0x18] sm:$0xff] }
  0x3e   :  { %306 = vmatpush.msrb.mxu2 %v153_v45  ;;  %346 = vmatpush.msrb.mxu3 %v315_v62  ;;  %v504_v62 = vld [vmem:[%s1684_s12 + $0xf0] sm:$0xff] }
  0x3f   :  { %266 = vmatpush.msrb.mxu0 %v121_v46  ;;  %285 = vmatpush.msrb.mxu1 %v138_v47  ;;  %v438_v47 = vld [vmem:[%s1682_s10 + $0x10] sm:$0xff] }
  0x40   :  { %307 = vmatpush.msrb.mxu2 %v152_v48  ;;  %377 = vmatpush.msra.mxu3 %v361_v63  ;;  %v437_v48 = vld [vmem:[%s1682_s10 + $0x8] sm:$0xff] }
  0x41   :  { %308 = vmatmul.f32.vlgmr.msrb.gmra.mxu2 %v55_v49  ;;  %267 = vmatpush.msrb.mxu0 %v120_v50  ;;  %v436_v49 = vld [vmem:[%s1682_s10] sm:$0xff]  ;;  %v523_v50 = vld [vmem:[%s1684_s12 + $0x188] sm:$0xff] }
  0x42   :  { %286 = vmatpush.msrb.mxu1 %v137_v51  ;;  %268 = vmatmul.f32.vlgmr.msrb.gmra.mxu0 %v53_v52  ;;  %v524_v51 = vld [vmem:[%s1684_s12 + $0x190] sm:$0xff]  ;;  %v525_v52 = vld [vmem:[%s1684_s12 + $0x198] sm:$0xff]  ;;  %v519_v63 = vld [vmem:[%s1684_s12 + $0x168] sm:$0xff] }
  0x43   :  { %378 = vmatpush.msra.mxu3 %v360_v0  ;;  %394 = vrot.lane.b32.xlu0 %v392_v24, %s894_s16  ;;  %v495_v0 = vld [vmem:[%s1684_s12 + $0xa8] sm:$0xff]  ;;  %v520_v24 = vld [vmem:[%s1684_s12 + $0x170] sm:$0xff] }
  0x44   :  { %287 = vmatpush.msrb.mxu1 %v136_v53  ;;  %427 = vmatpush.msra.mxu0 %v404_v30  ;;  %v516_v53 = vld [vmem:[%s1684_s12 + $0x150] sm:$0xff]  ;;  %v515_v30 = vld [vmem:[%s1684_s12 + $0x148] sm:$0xff] }
  0x45   :  { %288 = vmatmul.f32.vlgmr.msrb.gmra.mxu1 %v54_v54  ;;  %379 = vmatpush.msra.mxu3 %v359_v1  ;;  %v517_v54 = vld [vmem:[%s1684_s12 + $0x158] sm:$0xff]  ;;  %v496_v1 = vld [vmem:[%s1684_s12 + $0xb0] sm:$0xff] }
  0x46   :  { %428 = vmatpush.msra.mxu0 %v403_v31  ;;  %459 = vmatpush.msra.mxu1 %v443_v40  ;;  %v477_v31 = vld [vmem:[%s1684_s12 + $0x18] sm:$0xff]  ;;  %v494_v40 = vld [vmem:[%s1684_s12 + $0xa0] sm:$0xff] }
  0x47   :  { %380 = vmatpush.msra.mxu3 %v358_v2  ;;  %557 = vmatpush.msra.mxu2 %v523_v50  ;;  %v497_v2 = vld [vmem:[%s1684_s12 + $0xb8] sm:$0xff] }
  0x48   :  { %460 = vmatpush.msra.mxu1 %v442_v41  ;;  %597 = vmatpush.msrb.mxu0 %v525_v52  ;;  %v485_v41 = vld [vmem:[%s1684_s12 + $0x58] sm:$0xff]  ;;  %v530_v52 = vld [vmem:[%s1685_s13] sm:$0xff] }
  0x49   :  { %381 = vmatpush.msra.mxu3 %v357_v3  ;;  %558 = vmatpush.msra.mxu2 %v516_v53  ;;  %v512_v3 = vld [vmem:[%s1684_s12 + $0x130] sm:$0xff]  ;;  %v534_v53 = vperm.slane %v530_v52, 2 }
  0x4a   :  { %461 = vmatpush.msra.mxu1 %v441_v42  ;;  %598 = vmatpush.msrb.mxu0 %v518_v55  ;;  %v486_v42 = vld [vmem:[%s1684_s12 + $0x60] sm:$0xff] }
  0x4b   :  { %382 = vmatpush.msra.mxu3 %v356_v21  ;;  %559 = vmatpush.msra.mxu2 %v509_v56 }
  0x4c   :  { %462 = vmatpush.msra.mxu1 %v440_v43  ;;  %599 = vmatpush.msrb.mxu0 %v511_v58  ;;  %v487_v43 = vld [vmem:[%s1684_s12 + $0x68] sm:$0xff] }
  0x4d   :  { %383 = vmatpush.msra.mxu3 %v355_v22  ;;  %560 = vmatpush.msra.mxu2 %v502_v59  ;;  %v532_v59 = vperm.slane %v530_v52, 0 }
  0x4e   :  { %463 = vmatpush.msra.mxu1 %v439_v44  ;;  %600 = vmatpush.msrb.mxu0 %v504_v62  ;;  %v478_v44 = vld [vmem:[%s1684_s12 + $0x20] sm:$0xff] }
  0x4f   :  { %384 = vmatpush.msra.mxu3 %v354_v23  ;;  %561 = vmatpush.msra.mxu2 %v495_v0  ;;  %v491_v23 = vld [vmem:[%s1684_s12 + $0x88] sm:$0xff] }
  0x50   :  { %464 = vmatpush.msra.mxu1 %v438_v47  ;;  %601 = vmatpush.msrb.mxu0 %v497_v2  ;;  %v863_v47 = vld [vmem:[%s1683_s11] ss:$0 sm:$0xff] }
  0x52   :  { %465 = vmatpush.msra.mxu1 %v437_v48 }
  0x54   :  { %466 = vmatpush.msra.mxu1 %v436_v49 }
  0x56   :  { %617 = vmatpush.msrb.mxu1 %v526_v61 }
  0x58   :  { %618 = vmatpush.msrb.mxu1 %v519_v63 }
  0x5a   :  { %619 = vmatpush.msrb.mxu1 %v512_v3 }
  0xaa   :  { %v209_v7 = vpop.f32.mrf.mxu1  ;;  %v229_v8 = vpop.f32.mrf.mxu2 }
  0xae   :  { %v249_v10 = vpop.f32.mrf.mxu3 }
  0xb1   :  { %v189_v5 = vpop.f32.mrf.mxu0 }
  0xb2   :  { %v190_v6 = vadd.f32 %v859_v4, %v189_v5  ;;  %v488_v4 = vld [vmem:[%s1684_s12 + $0x70] sm:$0xff]  ;;  %v489_v5 = vld [vmem:[%s1684_s12 + $0x78] sm:$0xff] }
  0xb3   :  { %562 = vmatpush.msra.mxu2 %v488_v4 }
  0xb4   :  { %v210_v9 = vadd.f32 %v209_v7, %v190_v6  ;;  %v490_v6 = vld [vmem:[%s1684_s12 + $0x80] sm:$0xff]  ;;  %v505_v7 = vld [vmem:[%s1684_s12 + $0xf8] sm:$0xff] }
  0xb5   :  { %v395_v37 = vpop.permute.xlu0 %394  ;;  %602 = vmatpush.msrb.mxu0 %v490_v6  ;;  %620 = vmatpush.msrb.mxu1 %v505_v7 }
  0xb6   :  { %v230_v11 = vadd.f32 %v229_v8, %v210_v9  ;;  %v481_v8 = vld [vmem:[%s1684_s12 + $0x38] sm:$0xff]  ;;  %v482_v9 = vld [vmem:[%s1684_s12 + $0x40] sm:$0xff] }
  0xb7   :  { %563 = vmatpush.msra.mxu2 %v481_v8 }
  0xb8   :  { %v250_v12 = vadd.f32 %v249_v10, %v230_v11  ;;  %v483_v10 = vld [vmem:[%s1684_s12 + $0x48] sm:$0xff]  ;;  %v498_v11 = vld [vmem:[%s1684_s12 + $0xc0] sm:$0xff] }
  0xb9   :  { %603 = vmatpush.msrb.mxu0 %v483_v10  ;;  %621 = vmatpush.msrb.mxu1 %v498_v11 }
  0xbb   :  { %622 = vmatpush.msrb.mxu1 %v491_v23 }
  0xbf   :  { %v269_v13 = vpop.f32.mrf.mxu0 }
  0xc0   :  { %v270_v14 = vadd.f32 %v269_v13, %v250_v12  ;;  %v474_v12 = vld [vmem:[%s1684_s12] sm:$0xff]  ;;  %v475_v13 = vld [vmem:[%s1684_s12 + $0x8] sm:$0xff] }
  0xc1   :  { %564 = vmatpush.msra.mxu2 %v474_v12  ;;  %v536_v12 = vperm.slane %v530_v52, 4 }
  0xc2   :  { %v289_v15 = vpop.f32.mrf.mxu1 }
  0xc3   :  { %v290_v16 = vadd.f32 %v289_v15, %v270_v14  ;;  %v476_v14 = vld [vmem:[%s1684_s12 + $0x10] sm:$0xff]  ;;  %v527_v15 = vld [vmem:[%s1684_s12 + $0x1a8] sm:$0xff] }
  0xc4   :  { %v309_v17 = vpop.f32.mrf.mxu2  ;;  %604 = vmatpush.msrb.mxu0 %v476_v14  ;;  %637 = vmatpush.msrb.mxu2 %v527_v15 }
  0xc5   :  { %v310_v18 = vadd.f32 %v309_v17, %v290_v16  ;;  %v528_v16 = vld [vmem:[%s1684_s12 + $0x1b0] sm:$0xff]  ;;  %v529_v17 = vld [vmem:[%s1684_s12 + $0x1b8] sm:$0xff] }
  0xc6   :  { %638 = vmatpush.msrb.mxu2 %v520_v24 }
  0xc7   :  { %vm312_vm0 = vcmp.gt.f32.partialorder %v310_v18, 0.0  ;;  %v313_v19 = vmul.f32 0.2, %v310_v18 }
  0xc9   :  { %v314_v20 = vsel %vm312_vm0, %v310_v18, %v313_v19  ;;  %v862_v18 = vld [vmem:[%s1681_s9] ss:$0 sm:$0xff] }
  0xca   :  { %839 = vmatmul.msk.f32.vlgmr.msrb.gmra.mxu3 %vm327_vm1, %v314_v20 }
  0xcb   :  { %577 = vmatpush.msrb.mxu3 %v524_v51 }
  0xcd   :  { %578 = vmatpush.msrb.mxu3 %v517_v54  ;;  %v535_v54 = vperm.slane %v530_v52, 3 }
  0xcf   :  { %579 = vmatpush.msrb.mxu3 %v510_v57 }
  0xd1   :  { %580 = vmatpush.msrb.mxu3 %v503_v60  ;;  %v533_v60 = vperm.slane %v530_v52, 1 }
  0xd3   :  { %581 = vmatpush.msrb.mxu3 %v496_v1  ;;  %v538_v1 = vperm.slane %v530_v52, 6 }
  0xd5   :  { %582 = vmatpush.msrb.mxu3 %v489_v5 }
  0xd7   :  { %583 = vmatpush.msrb.mxu3 %v482_v9 }
  0xd9   :  { %584 = vmatpush.msrb.mxu3 %v475_v13  ;;  %v537_v13 = vperm.slane %v530_v52, 5 }
 0x14d   :  { %v348_v26 = vpop.f32.mrf.mxu3 }
 0x14e   :  { %v349_v27 = vadd.f32 %v860_v25, %v348_v26  ;;  %v521_v25 = vld [vmem:[%s1684_s12 + $0x178] sm:$0xff]  ;;  %v522_v26 = vld [vmem:[%s1684_s12 + $0x180] sm:$0xff] }
 0x150   :  { %vm351_vm2 = vcmp.gt.f32.partialorder %v349_v27, 0.0  ;;  %v352_v28 = vmul.f32 0.2, %v349_v27 }
 0x152   :  { %v353_v29 = vsel %vm351_vm2, %v349_v27, %v352_v28  ;;  %v484_v27 = vld [vmem:[%s1684_s12 + $0x50] sm:$0xff]  ;;  %v513_v28 = vld [vmem:[%s1684_s12 + $0x138] sm:$0xff] }
 0x153   :  { %840 = vmatmul.msk.f32.vlgmr.msra.gmra.mxu3 %vm327_vm1, %v353_v29  ;;  %v514_v29 = vld [vmem:[%s1684_s12 + $0x140] sm:$0xff]  ;;  %623 = vmatpush.msrb.mxu1 %v484_v27 }
 0x154   :  { %657 = vmatpush.msra.mxu3 %v528_v16  ;;  %639 = vmatpush.msrb.mxu2 %v513_v28 }
 0x155   :  { %624 = vmatpush.msrb.mxu1 %v477_v31 }
 0x156   :  { %658 = vmatpush.msra.mxu3 %v521_v25 }
 0x158   :  { %659 = vmatpush.msra.mxu3 %v514_v29 }
 0x1d6   :  { %v386_v33 = vpop.f32.mrf.mxu3 }
 0x1d7   :  { %v387_v34 = vadd.f32 %v861_v32, %v386_v33  ;;  %v506_v32 = vld [vmem:[%s1684_s12 + $0x100] sm:$0xff]  ;;  %v507_v33 = vld [vmem:[%s1684_s12 + $0x108] sm:$0xff] }
 0x1d8   :  { %640 = vmatpush.msrb.mxu2 %v506_v32  ;;  %660 = vmatpush.msra.mxu3 %v507_v33 }
 0x1d9   :  { %v389_v35 = vmul.f32 0.5, %v387_v34  ;;  %830 = vst.msk [vmem:[%s1680_s15] sm:$0xff] %vm829_vm3, %v387_v34 }
 0x1db   :  { %v390_v36 = vmul.f32 1.442695, %v389_v35  ;;  %v499_v35 = vld [vmem:[%s1684_s12 + $0xc8] sm:$0xff] }
 0x1dc   :  { %641 = vmatpush.msrb.mxu2 %v499_v35 }
 0x1dd   :  { %864 = vpow2.f32 %v390_v36  ;;  %v500_v36 = vld [vmem:[%s1684_s12 + $0xd0] sm:$0xff] }
 0x1de   :  { %661 = vmatpush.msra.mxu3 %v500_v36 }
 0x1e3   :  { %v865_v38 = vpop.eup %864 }
 0x1e4   :  { %v397_v39 = vmul.f32 %v865_v38, %v395_v37  ;;  %v501_v37 = vld [vmem:[%s1684_s12 + $0xd8] sm:$0xff]  ;;  %v492_v38 = vld [vmem:[%s1684_s12 + $0x90] sm:$0xff] }
 0x1e5   :  { %642 = vmatpush.msrb.mxu2 %v492_v38 }
 0x1e6   :  { %399 = vrot.lane.b32.xlu0 %v397_v39, %s895_s8  ;;  %v493_v39 = vld [vmem:[%s1684_s12 + $0x98] sm:$0xff] }
 0x1e7   :  { %662 = vmatpush.msra.mxu3 %v493_v39  ;;  %643 = vmatpush.msrb.mxu2 %v485_v41 }
 0x1e9   :  { %663 = vmatpush.msra.mxu3 %v486_v42  ;;  %644 = vmatpush.msrb.mxu2 %v478_v44 }
 0x258   :  { %v400_v45 = vpop.permute.xlu0 %399 }
 0x259   :  { %v402_v46 = vadd.f32 %v400_v45, %v387_v34  ;;  %v508_v34 = vld [vmem:[%s1684_s12 + $0x110] sm:$0xff]  ;;  %v479_v45 = vld [vmem:[%s1684_s12 + $0x28] sm:$0xff] }
 0x25a   :  { %664 = vmatpush.msra.mxu3 %v479_v45 }
 0x25b   :  { %841 = vmatmul.msk.f32.vlgmr.msra.gmra.mxu0 %vm409_vm4, %v402_v46  ;;  %v480_v46 = vld [vmem:[%s1684_s12 + $0x30] sm:$0xff] }
 0x25c   :  { %677 = vmatpush.msra.mxu0 %v529_v17 }
 0x25e   :  { %678 = vmatpush.msra.mxu0 %v522_v26 }
 0x260   :  { %679 = vmatpush.msra.mxu0 %v515_v30 }
 0x262   :  { %680 = vmatpush.msra.mxu0 %v508_v34 }
 0x264   :  { %681 = vmatpush.msra.mxu0 %v501_v37 }
 0x266   :  { %682 = vmatpush.msra.mxu0 %v494_v40 }
 0x268   :  { %683 = vmatpush.msra.mxu0 %v487_v43 }
 0x26a   :  { %684 = vmatpush.msra.mxu0 %v480_v46 }
 0x2d8   :  { %v430_v19 = vpop.f32.mrf.mxu0 }
 0x2d9   :  { %v431_v20 = vadd.f32 %v862_v18, %v430_v19 }
 0x2db   :  { %vm433_vm5 = vcmp.gt.f32.partialorder %v431_v20, 0.0  ;;  %v434_v21 = vmul.f32 0.2, %v431_v20 }
 0x2dd   :  { %v435_v22 = vsel %vm433_vm5, %v431_v20, %v434_v21 }
 0x2de   :  { %842 = vmatmul.msk.f32.vlgmr.msra.gmra.mxu1 %vm327_vm1, %v435_v22 }
 0x35b   :  { %v468_v48 = vpop.f32.mrf.mxu1 }
 0x35c   :  { %v469_v49 = vadd.f32 %v863_v47, %v468_v48 }
 0x35e   :  { %vm471_vm6 = vcmp.gt.f32.partialorder %v469_v49, 0.0  ;;  %v472_v50 = vmul.f32 0.2, %v469_v49 }
 0x360   :  { %v473_v51 = vsel %vm471_vm6, %v469_v49, %v472_v50 }
 0x361   :  { %843 = vmatmul.msk.f32.vlgmr.msra.gmra.mxu2 %vm327_vm1, %v473_v51  ;;  %844 = vmatmul.msk.f32.vlgmr.msrb.gmra.mxu3 %vm327_vm1, %v473_v51 }
 0x362   :  { %845 = vmatmul.msk.f32.vlgmr.msrb.gmra.mxu0 %vm327_vm1, %v473_v51  ;;  %846 = vmatmul.msk.f32.vlgmr.msrb.gmra.mxu1 %vm327_vm1, %v473_v51 }
 0x369   :  { %847 = vmatmul.msk.f32.vlgmr.msrb.gmra.mxu2 %vm327_vm1, %v473_v51  ;;  %848 = vmatmul.msk.f32.vlgmr.msra.gmra.mxu3 %vm327_vm1, %v473_v51 }
 0x36a   :  { %849 = vmatmul.msk.f32.vlgmr.msra.gmra.mxu0 %vm327_vm1, %v473_v51 }
 0x3df   :  { %v606_v55 = vpop.f32.mrf.mxu0  ;;  %v626_v56 = vpop.f32.mrf.mxu1 }
 0x3e0   :  { %v607_v57 = vadd.f32 %v606_v55, %v534_v53  ;;  %v627_v58 = vadd.f32 %v626_v56, %v535_v54 }
 0x3e2   :  { %v852_v61 = vmul.f32 -1.442695, %v607_v57  ;;  %v853_v62 = vmul.f32 -1.442695, %v627_v58 }
 0x3e4   :  { %866 = vpow2.f32 %v852_v61  ;;  %v566_v63 = vpop.f32.mrf.mxu2  ;;  %v586_v0 = vpop.f32.mrf.mxu3 }
 0x3e5   :  { %868 = vpow2.f32 %v853_v62  ;;  %v567_v2 = vadd.f32 %v566_v63, %v532_v59  ;;  %v587_v3 = vadd.f32 %v586_v0, %v533_v60 }
 0x3e7   :  { %v850_v4 = vmul.f32 -1.442695, %v567_v2  ;;  %v851_v5 = vmul.f32 -1.442695, %v587_v3  ;;  %v686_v6 = vpop.f32.mrf.mxu0 }
 0x3e8   :  { %v687_v7 = vadd.f32 %v686_v6, %v538_v1 }
 0x3e9   :  { %870 = vpow2.f32 %v850_v4 }
 0x3ea   :  { %v867_v8 = vpop.eup %866  ;;  %872 = vpow2.f32 %v851_v5  ;;  %v856_v9 = vmul.f32 -1.442695, %v687_v7 }
 0x3eb   :  { %v869_v10 = vpop.eup %868  ;;  %v712_v11 = vadd.f32 1.0, %v867_v8 }
 0x3ec   :  { %v713_v14 = vadd.f32 1.0, %v869_v10  ;;  %874 = vpow2.f32 %v856_v9  ;;  %v646_v15 = vpop.f32.mrf.mxu2  ;;  %v666_v16 = vpop.f32.mrf.mxu3 }
 0x3ed   :  { %876 = vrcp.f32 %v712_v11  ;;  %v647_v18 = vadd.f32 %v646_v15, %v536_v12  ;;  %v667_v19 = vadd.f32 %v666_v16, %v537_v13  ;;  %v756_v26 = vand.u32 2147483647, %v712_v11 }
 0x3ee   :  { %878 = vrcp.f32 %v713_v14  ;;  %v758_v30 = vand.u32 2147483648, %v712_v11  ;;  %vm752_vm7 = vweird.f32 %v712_v11  ;;  %v771_v32 = vand.u32 2147483647, %v713_v14 }
 0x3ef   :  { %v871_v17 = vpop.eup %870  ;;  %v854_v24 = vmul.f32 -1.442695, %v647_v18  ;;  %v855_v27 = vmul.f32 -1.442695, %v667_v19  ;;  %v773_v34 = vand.u32 2147483648, %v713_v14  ;;  %vm1621_vm8 = vcmp.eq.f32.partialorder %v756_v26, 8.507059e+37 }
 0x3f0   :  { %v873_v20 = vpop.eup %872  ;;  %v1613_v21 = vadd.f32 1.0, %v871_v17  ;;  %vm767_vm9 = vweird.f32 %v713_v14  ;;  %v759_v40 = vor.u32 1.1754944e-38, %v758_v30  ;;  %vm1626_vm12 = vcmp.eq.f32.partialorder %v771_v32, 8.507059e+37 }
 0x3f1   :  { %v1615_v22 = vadd.f32 1.0, %v873_v20  ;;  %v774_v46 = vor.u32 1.1754944e-38, %v773_v34 }
 0x3f2   :  { %v875_v23 = vpop.eup %874  ;;  %880 = vrcp.f32 %v1613_v21  ;;  %v726_v47 = vand.u32 2147483647, %v1613_v21  ;;  %v728_v51 = vand.u32 2147483648, %v1613_v21  ;;  %vm722_vm1 = vweird.f32 %v1613_v21 }
 0x3f3   :  { %v877_v25 = vpop.eup %876  ;;  %882 = vrcp.f32 %v1615_v22  ;;  %v1619_v35 = vadd.f32 1.0, %v875_v23  ;;  %v741_v52 = vand.u32 2147483647, %v1615_v22  ;;  %v743_v56 = vand.u32 2147483648, %v1615_v22 }
 0x3f4   :  { %v879_v28 = vpop.eup %878  ;;  %v748_v29 = vmul.f32 %v877_v25, %v712_v11  ;;  %884 = vpow2.f32 %v854_v24  ;;  %vm753_vm10 = vweird.f32 %v877_v25  ;;  %vm727_vm3 = vcmp.eq.f32.partialorder %v726_v47, 8.507059e+37 }
 0x3f5   :  { %v763_v31 = vmul.f32 %v879_v28, %v713_v14  ;;  %886 = vpow2.f32 %v855_v27  ;;  %vm768_vm11 = vweird.f32 %v879_v28  ;;  %vm754_vm13 = vmor %vm752_vm7, %vm753_vm10  ;;  %v729_v4 = vor.u32 1.1754944e-38, %v728_v51 }
 0x3f6   :  { %v749_v33 = vsub.f32 1.0, %v748_v29  ;;  %888 = vrcp.f32 %v1619_v35  ;;  %vm769_vm14 = vmor %vm767_vm9, %vm768_vm11  ;;  %vm737_vm4 = vweird.f32 %v1615_v22  ;;  %v744_v7 = vor.u32 1.1754944e-38, %v743_v56 }
 0x3f7   :  { %v764_v37 = vsub.f32 1.0, %v763_v31  ;;  %vm742_vm6 = vcmp.eq.f32.partialorder %v741_v52, 8.507059e+37  ;;  %v818_v11 = vand.u32 2147483648, %v1619_v35  ;;  %v816_v14 = vand.u32 2147483647, %v1619_v35 }
 0x3f8   :  { %v881_v38 = vpop.eup %880  ;;  %v750_v39 = vmul.f32 %v877_v25, %v749_v33 }
 0x3f9   :  { %v883_v41 = vpop.eup %882  ;;  %v765_v42 = vmul.f32 %v879_v28, %v764_v37  ;;  %v718_v44 = vmul.f32 %v881_v38, %v1613_v21  ;;  %vm723_vm15 = vweird.f32 %v881_v38  ;;  %v819_v17 = vor.u32 1.1754944e-38, %v818_v11 }
 0x3fa   :  { %v751_v45 = vadd.f32 %v877_v25, %v750_v39  ;;  %v733_v48 = vmul.f32 %v883_v41, %v1615_v22  ;;  %v885_v53 = vpop.eup %884  ;;  %vm738_vm0 = vweird.f32 %v883_v41  ;;  %vm724_vm2 = vmor %vm722_vm1, %vm723_vm15  ;;  %vm817_vm10 = vcmp.eq.f32.partialorder %v816_v14, 8.507059e+37 }
 0x3fb   :  { %v766_v49 = vadd.f32 %v879_v28, %v765_v42  ;;  %v719_v50 = vsub.f32 1.0, %v718_v44  ;;  %v887_v57 = vpop.eup %886  ;;  %v714_v61 = vadd.f32 1.0, %v885_v53  ;;  %vm739_vm5 = vmor %vm737_vm4, %vm738_vm0 }
 0x3fc   :  { %v755_v54 = vsel %vm754_vm13, %v877_v25, %v751_v45  ;;  %v734_v55 = vsub.f32 1.0, %v733_v48  ;;  %v889_v62 = vpop.eup %888  ;;  %v715_v1 = vadd.f32 1.0, %v887_v57 }
 0x3fd   :  { %v760_v58 = vsel %vm1621_vm8, %v759_v40, %v755_v54  ;;  %v770_v59 = vsel %vm769_vm14, %v879_v28, %v766_v49  ;;  %v720_v60 = vmul.f32 %v881_v38, %v719_v50  ;;  %v808_v3 = vmul.f32 %v889_v62, %v1619_v35 }
 0x3fe   :  { %824 = vst [vmem:[%s1686_s14 + $0x10] sm:$0xff] %v760_v58  ;;  %v775_v63 = vsel %vm1626_vm12, %v774_v46, %v770_v59  ;;  %v735_v0 = vmul.f32 %v883_v41, %v734_v55  ;;  %890 = vrcp.f32 %v714_v61  ;;  %vm813_vm7 = vweird.f32 %v889_v62 }
 0x3ff   :  { %825 = vst [vmem:[%s1686_s14 + $0x18] sm:$0xff] %v775_v63  ;;  %v721_v2 = vadd.f32 %v881_v38, %v720_v60  ;;  %v809_v8 = vsub.f32 1.0, %v808_v3  ;;  %892 = vrcp.f32 %v715_v1  ;;  %vm812_vm8 = vweird.f32 %v1619_v35 }
 0x400   :  { %v736_v5 = vadd.f32 %v883_v41, %v735_v0  ;;  %vm814_vm9 = vmor %vm812_vm8, %vm813_vm7  ;;  %v788_v24 = vand.u32 2147483648, %v714_v61  ;;  %v786_v26 = vand.u32 2147483647, %v714_v61  ;;  %vm782_vm12 = vweird.f32 %v714_v61 }
 0x401   :  { %v725_v6 = vsel %vm724_vm2, %v881_v38, %v721_v2  ;;  %v810_v13 = vmul.f32 %v889_v62, %v809_v8  ;;  %v803_v28 = vand.u32 2147483648, %v715_v1  ;;  %v801_v31 = vand.u32 2147483647, %v715_v1 }
 0x402   :  { %v730_v9 = vsel %vm727_vm3, %v729_v4, %v725_v6  ;;  %v740_v10 = vsel %vm739_vm5, %v883_v41, %v736_v5  ;;  %v789_v32 = vor.u32 1.1754944e-38, %v788_v24  ;;  %vm787_vm15 = vcmp.eq.f32.partialorder %v786_v26, 8.507059e+37 }
 0x403   :  { %822 = vst [vmem:[%s1686_s14] sm:$0xff] %v730_v9  ;;  %v745_v12 = vsel %vm742_vm6, %v744_v7, %v740_v10  ;;  %v811_v16 = vadd.f32 %v889_v62, %v810_v13  ;;  %vm797_vm0 = vweird.f32 %v715_v1  ;;  %v804_v36 = vor.u32 1.1754944e-38, %v803_v28 }
 0x404   :  { %823 = vst [vmem:[%s1686_s14 + $0x8] sm:$0xff] %v745_v12  ;;  %v891_v15 = vpop.eup %890  ;;  %vm802_vm2 = vcmp.eq.f32.partialorder %v801_v31, 8.507059e+37 }
 0x405   :  { %v778_v18 = vmul.f32 %v891_v15, %v714_v61  ;;  %v893_v19 = vpop.eup %892  ;;  %v815_v20 = vsel %vm814_vm9, %v889_v62, %v811_v16  ;;  %vm783_vm11 = vweird.f32 %v891_v15 }
 0x406   :  { %v820_v21 = vsel %vm817_vm10, %v819_v17, %v815_v20  ;;  %v793_v23 = vmul.f32 %v893_v19, %v715_v1  ;;  %vm798_vm13 = vweird.f32 %v893_v19  ;;  %vm784_vm14 = vmor %vm782_vm12, %vm783_vm11 }
 0x407   :  { %v779_v22 = vsub.f32 1.0, %v778_v18  ;;  %828 = vst [vmem:[%s1686_s14 + $0x30] sm:$0xff] %v820_v21  ;;  %vm799_vm1 = vmor %vm797_vm0, %vm798_vm13 }
 0x408   :  { %v794_v27 = vsub.f32 1.0, %v793_v23 }
 0x409   :  { %v780_v25 = vmul.f32 %v891_v15, %v779_v22 }
 0x40a   :  { %v795_v30 = vmul.f32 %v893_v19, %v794_v27 }
 0x40b   :  { %v781_v29 = vadd.f32 %v891_v15, %v780_v25 }
 0x40c   :  { %v796_v34 = vadd.f32 %v893_v19, %v795_v30 }
 0x40d   :  { %v785_v33 = vsel %vm784_vm14, %v891_v15, %v781_v29 }
 0x40e   :  { %v790_v35 = vsel %vm787_vm15, %v789_v32, %v785_v33  ;;  %v800_v37 = vsel %vm799_vm1, %v893_v19, %v796_v34 }
 0x40f   :  { %826 = vst [vmem:[%s1686_s14 + $0x20] sm:$0xff] %v790_v35  ;;  %v805_v38 = vsel %vm802_vm2, %v804_v36, %v800_v37 }
 0x410   :  { %827 = vst [vmem:[%s1686_s14 + $0x28] sm:$0xff] %v805_v38 }

</bundles_post_ra>
